<compile_context>
chip_gen: v5e
topology: v5e:2x2
jax: 0.10.0
libtpu: 0.0.40
codegen_flags: <defaults>
</compile_context>

<pallas_src>
import jax
import jax.numpy as jnp
from jax.experimental import pallas as pl
from jax.experimental.pallas import tpu as pltpu


RAW_IN = 25     # PyTorch fc1 input features
PAD_IN = 32     # zero-padded input features (layout-clean, exact)

# (in_features, out_features) per layer, with the padded first layer.
LAYER_DIMS = [(PAD_IN, 64), (64, 64), (64, 128), (128, 128),
              (128, 256), (256, 256), (256, 1)]


def mlp_kernel(x_ref,
               w1, b1, w2, b2, w3, b3, w4, b4, w5, b5, w6, b6,
               w7_row, b7,
               o_ref):
    """One batch tile: six MXU layers (bf16 operands, f32 accumulation) plus
    the 256->1 head as a VPU multiply + lane reduction (keeps the N=1 layer
    off the MXU, which would otherwise burn a full pass at <1% column
    utilization)."""

    def dense_relu(h_bf16, w_ref, b_ref):
        y = jnp.dot(h_bf16, w_ref[...],
                    preferred_element_type=jnp.float32) + b_ref[...]
        return jnp.maximum(y, 0.0).astype(jnp.bfloat16)

    h = x_ref[...]                      # (TM, 32) bf16
    h = dense_relu(h, w1, b1)
    h = dense_relu(h, w2, b2)
    h = dense_relu(h, w3, b3)
    h = dense_relu(h, w4, b4)
    h = dense_relu(h, w5, b5)
    h = dense_relu(h, w6, b6)           # (TM, 256) bf16
    # x.view(-1, 256) is a no-op for (TM, 256) activations.
    # Final Linear(256, 1): VPU mul (f32) + cross-lane reduce -> (TM, 1).
    y = jnp.sum(h.astype(jnp.float32) * w7_row[...], axis=-1,
                keepdims=True) + b7[...]
    o_ref[...] = jnp.tanh(y).astype(o_ref.dtype)


def _round_up(n, m):
    return ((n + m - 1) // m) * m


def net_forward(x, params, *, tile_m=1024):
    """x: (B, 25) float.
    params: 6x (w bf16 (in,out), b f32 (1,out)) then (w7 f32 (1,256), b7 f32 (1,1))."""
    B, F = x.shape
    assert F == RAW_IN

    # Batch tile: multiple of 16 (bf16 sublane packing).  Aim for >= 4 grid
    # tiles on large batches so v7x's two TensorCores both get work, but keep
    # tiles >= 128 rows so per-grid-step overhead stays amortized.
    TM = min(tile_m, max(128, _round_up(pl.cdiv(B, 4), 16)))
    TM = min(TM, _round_up(B, 16))          # never exceed the padded batch
    Bp = _round_up(B, TM)
    num_tiles = Bp // TM

    # Single fused preprocessing pass over the only streaming input:
    # bf16 cast + one pad covering both the feature pad (25->32, exact because
    # the matching w1 rows are zero) and the batch pad.
    x = jnp.pad(x.astype(jnp.bfloat16), ((0, Bp - B), (0, PAD_IN - F)))

    flat_params = []
    in_specs = [pl.BlockSpec((TM, PAD_IN), lambda i: (i, 0))]
    for (w, b) in params:
        flat_params += [w, b]
        # Full-array blocks with a constant index_map -> weights/biases stay
        # resident in VMEM across all batch tiles.  Left at default buffering:
        # the duplicate copies total <0.6 MB, well inside scoped VMEM on every
        # generation, so we skip the extra pipeline_mode knob.
        in_specs.append(pl.BlockSpec(w.shape, lambda i: (0, 0)))
        in_specs.append(pl.BlockSpec(b.shape, lambda i: (0, 0)))

    flops = int(2 * Bp * sum(fi * fo for fi, fo in LAYER_DIMS))
    bytes_accessed = int(
        x.size * x.dtype.itemsize
        + sum(int(p.size) * p.dtype.itemsize for p in flat_params)
        + Bp * 4)  # output

    compiler_kwargs = dict(dimension_semantics=("parallel",))
    if TM > 1024:
        # Only needed when tiles are pushed past the default: v5e's scoped
        # VMEM defaults to 16 MiB (physical VMEM has ample headroom).
        compiler_kwargs["vmem_limit_bytes"] = 48 * 1024 * 1024

    out = pl.pallas_call(
        mlp_kernel,
        out_shape=jax.ShapeDtypeStruct((Bp, 1), jnp.float32),
        grid=(num_tiles,),
        in_specs=in_specs,
        out_specs=pl.BlockSpec((TM, 1), lambda i: (i, 0)),
        compiler_params=pltpu.CompilerParams(**compiler_kwargs),
        cost_estimate=pl.CostEstimate(
            flops=flops, transcendentals=int(Bp),
            bytes_accessed=bytes_accessed),
    )(x, *flat_params)

    return out[:B]


def init_params(key):
    """Deterministic init mimicking PyTorch's default Linear init:
    U(-1/sqrt(fan_in), 1/sqrt(fan_in)).  Layers 1-6 stored (in, out) in bf16
    for the MXU (biases f32, (1, out)); the 256->1 head is stored as an f32
    (1, 256) row for the in-kernel VPU reduce."""
    params = []
    n_layers = len(LAYER_DIMS)
    for i, (fan_in, fan_out) in enumerate(LAYER_DIMS):
        key, kw, kb = jax.random.split(key, 3)
        real_fan_in = RAW_IN if i == 0 else fan_in
        bound = 1.0 / (real_fan_in ** 0.5)
        w = jax.random.uniform(kw, (real_fan_in, fan_out), jnp.float32, -bound, bound)
        b = jax.random.uniform(kb, (1, fan_out), jnp.float32, -bound, bound)
        if i == 0:
            # zero rows for the padded (unused) input features -> exact
            w = jnp.pad(w, ((0, PAD_IN - RAW_IN), (0, 0)))
        if i == n_layers - 1:
            params.append((w.T, b))                      # (1, 256) f32, (1, 1) f32
        else:
            params.append((w.astype(jnp.bfloat16), b))   # bf16 MXU operand
    return params


def reference_forward(x, params):
    """Pure-JAX reference with the same bf16-operand / f32-accumulate numerics."""
    h = jnp.pad(x.astype(jnp.float32),
                ((0, 0), (0, PAD_IN - x.shape[1]))).astype(jnp.bfloat16)
    for (w, b) in params[:-1]:
        y = jnp.dot(h.astype(jnp.float32), w.astype(jnp.float32)) + b
        h = jnp.maximum(y, 0.0).astype(jnp.bfloat16)
    w7_row, b7 = params[-1]
    y = jnp.sum(h.astype(jnp.float32) * w7_row, axis=-1, keepdims=True) + b7
    return jnp.tanh(y)


if __name__ == "__main__":
    key = jax.random.PRNGKey(0)
    key, kx = jax.random.split(key)

    batch = 8
    x = jax.random.normal(kx, (batch, RAW_IN), jnp.float32)
    params = init_params(key)

    out = jax.block_until_ready(net_forward(x, params))

    ref = reference_forward(x, params)
    assert out.shape == (batch, 1)
    assert jnp.allclose(out, ref, atol=2e-3, rtol=2e-3), \
        float(jnp.max(jnp.abs(out - ref)))

    print("KERNEL_OK")
</pallas_src>

<mosaic_0001>
module attributes {stable_mosaic.version = 11 : i64} {
  func.func @mlp_kernel(%arg0: i32, %arg1: memref<16x32xbf16, #tpu.memory_space<vmem>>, %arg2: memref<32x64xbf16, #tpu.memory_space<vmem>>, %arg3: memref<1x64xf32, #tpu.memory_space<vmem>>, %arg4: memref<64x64xbf16, #tpu.memory_space<vmem>>, %arg5: memref<1x64xf32, #tpu.memory_space<vmem>>, %arg6: memref<64x128xbf16, #tpu.memory_space<vmem>>, %arg7: memref<1x128xf32, #tpu.memory_space<vmem>>, %arg8: memref<128x128xbf16, #tpu.memory_space<vmem>>, %arg9: memref<1x128xf32, #tpu.memory_space<vmem>>, %arg10: memref<128x256xbf16, #tpu.memory_space<vmem>>, %arg11: memref<1x256xf32, #tpu.memory_space<vmem>>, %arg12: memref<256x256xbf16, #tpu.memory_space<vmem>>, %arg13: memref<1x256xf32, #tpu.memory_space<vmem>>, %arg14: memref<1x256xf32, #tpu.memory_space<vmem>>, %arg15: memref<1x1xf32, #tpu.memory_space<vmem>>, %arg16: memref<16x1xf32, #tpu.memory_space<vmem>>) attributes {dimension_semantics = [#tpu.dimension_semantics<parallel>], iteration_bounds = array<i64: 1>, scalar_prefetch = 0 : i64, scratch_operands = 0 : i64, tpu.core_type = #tpu.core_type<tc>, window_params = [{transform_indices = @transform_0, window_bounds = array<i64: 16, 32>}, {pipeline_mode = #tpu.pipeline_mode<synchronous>, transform_indices = @transform_1, window_bounds = array<i64: 32, 64>}, {pipeline_mode = #tpu.pipeline_mode<synchronous>, transform_indices = @transform_2, window_bounds = array<i64: 1, 64>}, {pipeline_mode = #tpu.pipeline_mode<synchronous>, transform_indices = @transform_3, window_bounds = array<i64: 64, 64>}, {pipeline_mode = #tpu.pipeline_mode<synchronous>, transform_indices = @transform_4, window_bounds = array<i64: 1, 64>}, {pipeline_mode = #tpu.pipeline_mode<synchronous>, transform_indices = @transform_5, window_bounds = array<i64: 64, 128>}, {pipeline_mode = #tpu.pipeline_mode<synchronous>, transform_indices = @transform_6, window_bounds = array<i64: 1, 128>}, {pipeline_mode = #tpu.pipeline_mode<synchronous>, transform_indices = @transform_7, window_bounds = array<i64: 128, 128>}, {pipeline_mode = #tpu.pipeline_mode<synchronous>, transform_indices = @transform_8, window_bounds = array<i64: 1, 128>}, {pipeline_mode = #tpu.pipeline_mode<synchronous>, transform_indices = @transform_9, window_bounds = array<i64: 128, 256>}, {pipeline_mode = #tpu.pipeline_mode<synchronous>, transform_indices = @transform_10, window_bounds = array<i64: 1, 256>}, {pipeline_mode = #tpu.pipeline_mode<synchronous>, transform_indices = @transform_11, window_bounds = array<i64: 256, 256>}, {pipeline_mode = #tpu.pipeline_mode<synchronous>, transform_indices = @transform_12, window_bounds = array<i64: 1, 256>}, {pipeline_mode = #tpu.pipeline_mode<synchronous>, transform_indices = @transform_13, window_bounds = array<i64: 1, 256>}, {pipeline_mode = #tpu.pipeline_mode<synchronous>, transform_indices = @transform_14, window_bounds = array<i64: 1, 1>}, {transform_indices = @transform_15, window_bounds = array<i64: 16, 1>}]} {
    %c0 = arith.constant 0 : index
    %c0_0 = arith.constant 0 : index
    %0 = vector.load %arg1[%c0, %c0_0] : memref<16x32xbf16, #tpu.memory_space<vmem>>, vector<16x32xbf16>
    %c0_1 = arith.constant 0 : index
    %c0_2 = arith.constant 0 : index
    %1 = vector.load %arg2[%c0_1, %c0_2] : memref<32x64xbf16, #tpu.memory_space<vmem>>, vector<32x64xbf16>
    %cst = arith.constant dense<0.000000e+00> : vector<16x64xf32>
    %2 = tpu.matmul %0, %1, %cst {dimension_numbers = #tpu.dot_dimension_numbers<[1], [0], [0], [1], [0, 0, 1, 1], [], []>} : vector<16x32xbf16>, vector<32x64xbf16>, vector<16x64xf32> -> vector<16x64xf32>
    %c0_3 = arith.constant 0 : index
    %c0_4 = arith.constant 0 : index
    %3 = vector.load %arg3[%c0_3, %c0_4] : memref<1x64xf32, #tpu.memory_space<vmem>>, vector<1x64xf32>
    %4 = vector.broadcast %3 : vector<1x64xf32> to vector<16x64xf32>
    %5 = arith.addf %2, %4 : vector<16x64xf32>
    %cst_5 = arith.constant 0.000000e+00 : f32
    %6 = vector.broadcast %cst_5 : f32 to vector<16x64xf32>
    %7 = arith.maximumf %5, %6 : vector<16x64xf32>
    %8 = arith.truncf %7 : vector<16x64xf32> to vector<16x64xbf16>
    %c0_6 = arith.constant 0 : index
    %c0_7 = arith.constant 0 : index
    %9 = vector.load %arg4[%c0_6, %c0_7] : memref<64x64xbf16, #tpu.memory_space<vmem>>, vector<64x64xbf16>
    %cst_8 = arith.constant dense<0.000000e+00> : vector<16x64xf32>
    %10 = tpu.matmul %8, %9, %cst_8 {dimension_numbers = #tpu.dot_dimension_numbers<[1], [0], [0], [1], [0, 0, 1, 1], [], []>} : vector<16x64xbf16>, vector<64x64xbf16>, vector<16x64xf32> -> vector<16x64xf32>
    %c0_9 = arith.constant 0 : index
    %c0_10 = arith.constant 0 : index
    %11 = vector.load %arg5[%c0_9, %c0_10] : memref<1x64xf32, #tpu.memory_space<vmem>>, vector<1x64xf32>
    %12 = vector.broadcast %11 : vector<1x64xf32> to vector<16x64xf32>
    %13 = arith.addf %10, %12 : vector<16x64xf32>
    %cst_11 = arith.constant 0.000000e+00 : f32
    %14 = vector.broadcast %cst_11 : f32 to vector<16x64xf32>
    %15 = arith.maximumf %13, %14 : vector<16x64xf32>
    %16 = arith.truncf %15 : vector<16x64xf32> to vector<16x64xbf16>
    %c0_12 = arith.constant 0 : index
    %c0_13 = arith.constant 0 : index
    %17 = vector.load %arg6[%c0_12, %c0_13] : memref<64x128xbf16, #tpu.memory_space<vmem>>, vector<64x128xbf16>
    %cst_14 = arith.constant dense<0.000000e+00> : vector<16x128xf32>
    %18 = tpu.matmul %16, %17, %cst_14 {dimension_numbers = #tpu.dot_dimension_numbers<[1], [0], [0], [1], [0, 0, 1, 1], [], []>} : vector<16x64xbf16>, vector<64x128xbf16>, vector<16x128xf32> -> vector<16x128xf32>
    %c0_15 = arith.constant 0 : index
    %c0_16 = arith.constant 0 : index
    %19 = vector.load %arg7[%c0_15, %c0_16] : memref<1x128xf32, #tpu.memory_space<vmem>>, vector<1x128xf32>
    %20 = vector.broadcast %19 : vector<1x128xf32> to vector<16x128xf32>
    %21 = arith.addf %18, %20 : vector<16x128xf32>
    %cst_17 = arith.constant 0.000000e+00 : f32
    %22 = vector.broadcast %cst_17 : f32 to vector<16x128xf32>
    %23 = arith.maximumf %21, %22 : vector<16x128xf32>
    %24 = arith.truncf %23 : vector<16x128xf32> to vector<16x128xbf16>
    %c0_18 = arith.constant 0 : index
    %c0_19 = arith.constant 0 : index
    %25 = vector.load %arg8[%c0_18, %c0_19] : memref<128x128xbf16, #tpu.memory_space<vmem>>, vector<128x128xbf16>
    %cst_20 = arith.constant dense<0.000000e+00> : vector<16x128xf32>
    %26 = tpu.matmul %24, %25, %cst_20 {dimension_numbers = #tpu.dot_dimension_numbers<[1], [0], [0], [1], [0, 0, 1, 1], [], []>} : vector<16x128xbf16>, vector<128x128xbf16>, vector<16x128xf32> -> vector<16x128xf32>
    %c0_21 = arith.constant 0 : index
    %c0_22 = arith.constant 0 : index
    %27 = vector.load %arg9[%c0_21, %c0_22] : memref<1x128xf32, #tpu.memory_space<vmem>>, vector<1x128xf32>
    %28 = vector.broadcast %27 : vector<1x128xf32> to vector<16x128xf32>
    %29 = arith.addf %26, %28 : vector<16x128xf32>
    %cst_23 = arith.constant 0.000000e+00 : f32
    %30 = vector.broadcast %cst_23 : f32 to vector<16x128xf32>
    %31 = arith.maximumf %29, %30 : vector<16x128xf32>
    %32 = arith.truncf %31 : vector<16x128xf32> to vector<16x128xbf16>
    %c0_24 = arith.constant 0 : index
    %c0_25 = arith.constant 0 : index
    %33 = vector.load %arg10[%c0_24, %c0_25] : memref<128x256xbf16, #tpu.memory_space<vmem>>, vector<128x256xbf16>
    %cst_26 = arith.constant dense<0.000000e+00> : vector<16x256xf32>
    %34 = tpu.matmul %32, %33, %cst_26 {dimension_numbers = #tpu.dot_dimension_numbers<[1], [0], [0], [1], [0, 0, 1, 1], [], []>} : vector<16x128xbf16>, vector<128x256xbf16>, vector<16x256xf32> -> vector<16x256xf32>
    %c0_27 = arith.constant 0 : index
    %c0_28 = arith.constant 0 : index
    %35 = vector.load %arg11[%c0_27, %c0_28] : memref<1x256xf32, #tpu.memory_space<vmem>>, vector<1x256xf32>
    %36 = vector.broadcast %35 : vector<1x256xf32> to vector<16x256xf32>
    %37 = arith.addf %34, %36 : vector<16x256xf32>
    %cst_29 = arith.constant 0.000000e+00 : f32
    %38 = vector.broadcast %cst_29 : f32 to vector<16x256xf32>
    %39 = arith.maximumf %37, %38 : vector<16x256xf32>
    %40 = arith.truncf %39 : vector<16x256xf32> to vector<16x256xbf16>
    %c0_30 = arith.constant 0 : index
    %c0_31 = arith.constant 0 : index
    %41 = vector.load %arg12[%c0_30, %c0_31] : memref<256x256xbf16, #tpu.memory_space<vmem>>, vector<256x256xbf16>
    %cst_32 = arith.constant dense<0.000000e+00> : vector<16x256xf32>
    %42 = tpu.matmul %40, %41, %cst_32 {dimension_numbers = #tpu.dot_dimension_numbers<[1], [0], [0], [1], [0, 0, 1, 1], [], []>} : vector<16x256xbf16>, vector<256x256xbf16>, vector<16x256xf32> -> vector<16x256xf32>
    %c0_33 = arith.constant 0 : index
    %c0_34 = arith.constant 0 : index
    %43 = vector.load %arg13[%c0_33, %c0_34] : memref<1x256xf32, #tpu.memory_space<vmem>>, vector<1x256xf32>
    %44 = vector.broadcast %43 : vector<1x256xf32> to vector<16x256xf32>
    %45 = arith.addf %42, %44 : vector<16x256xf32>
    %cst_35 = arith.constant 0.000000e+00 : f32
    %46 = vector.broadcast %cst_35 : f32 to vector<16x256xf32>
    %47 = arith.maximumf %45, %46 : vector<16x256xf32>
    %48 = arith.truncf %47 : vector<16x256xf32> to vector<16x256xbf16>
    %49 = arith.extf %48 : vector<16x256xbf16> to vector<16x256xf32>
    %c0_36 = arith.constant 0 : index
    %c0_37 = arith.constant 0 : index
    %50 = vector.load %arg14[%c0_36, %c0_37] : memref<1x256xf32, #tpu.memory_space<vmem>>, vector<1x256xf32>
    %51 = vector.broadcast %50 : vector<1x256xf32> to vector<16x256xf32>
    %52 = arith.mulf %49, %51 : vector<16x256xf32>
    %cst_38 = arith.constant dense<0.000000e+00> : vector<16xf32>
    %53 = vector.multi_reduction <add>, %52, %cst_38 [1] : vector<16x256xf32> to vector<16xf32>
    %54 = vector.shape_cast %53 : vector<16xf32> to vector<16x1xf32>
    %c0_39 = arith.constant 0 : index
    %c0_40 = arith.constant 0 : index
    %55 = vector.load %arg15[%c0_39, %c0_40] : memref<1x1xf32, #tpu.memory_space<vmem>>, vector<1x1xf32>
    %56 = vector.broadcast %55 : vector<1x1xf32> to vector<16x1xf32>
    %57 = arith.addf %54, %56 : vector<16x1xf32>
    %58 = math.tanh %57 : vector<16x1xf32>
    %c0_41 = arith.constant 0 : index
    %c0_42 = arith.constant 0 : index
    %59 = vector.load %arg16[%c0_41, %c0_42] : memref<16x1xf32, #tpu.memory_space<vmem>>, vector<16x1xf32>
    tpu.vector_store %arg16[%c0_41, %c0_42], %58 {strides = array<i32>} : memref<16x1xf32, #tpu.memory_space<vmem>>, vector<16x1xf32>,
    return
  }
  func.func @transform_0(%arg0: i32) -> (i32, i32) {
    %c0_i32 = arith.constant 0 : i32
    %c0_i32_0 = arith.constant 0 : i32
    return %arg0, %c0_i32 : i32, i32
  }
  func.func @transform_1(%arg0: i32) -> (i32, i32) {
    %c0_i32 = arith.constant 0 : i32
    %c0_i32_0 = arith.constant 0 : i32
    %c0_i32_1 = arith.constant 0 : i32
    return %c0_i32, %c0_i32_0 : i32, i32
  }
  func.func @transform_2(%arg0: i32) -> (i32, i32) {
    %c0_i32 = arith.constant 0 : i32
    %c0_i32_0 = arith.constant 0 : i32
    %c0_i32_1 = arith.constant 0 : i32
    return %c0_i32, %c0_i32_0 : i32, i32
  }
  func.func @transform_3(%arg0: i32) -> (i32, i32) {
    %c0_i32 = arith.constant 0 : i32
    %c0_i32_0 = arith.constant 0 : i32
    %c0_i32_1 = arith.constant 0 : i32
    return %c0_i32, %c0_i32_0 : i32, i32
  }
  func.func @transform_4(%arg0: i32) -> (i32, i32) {
    %c0_i32 = arith.constant 0 : i32
    %c0_i32_0 = arith.constant 0 : i32
    %c0_i32_1 = arith.constant 0 : i32
    return %c0_i32, %c0_i32_0 : i32, i32
  }
  func.func @transform_5(%arg0: i32) -> (i32, i32) {
    %c0_i32 = arith.constant 0 : i32
    %c0_i32_0 = arith.constant 0 : i32
    %c0_i32_1 = arith.constant 0 : i32
    return %c0_i32, %c0_i32_0 : i32, i32
  }
  func.func @transform_6(%arg0: i32) -> (i32, i32) {
    %c0_i32 = arith.constant 0 : i32
    %c0_i32_0 = arith.constant 0 : i32
    %c0_i32_1 = arith.constant 0 : i32
    return %c0_i32, %c0_i32_0 : i32, i32
  }
  func.func @transform_7(%arg0: i32) -> (i32, i32) {
    %c0_i32 = arith.constant 0 : i32
    %c0_i32_0 = arith.constant 0 : i32
    %c0_i32_1 = arith.constant 0 : i32
    return %c0_i32, %c0_i32_0 : i32, i32
  }
  func.func @transform_8(%arg0: i32) -> (i32, i32) {
    %c0_i32 = arith.constant 0 : i32
    %c0_i32_0 = arith.constant 0 : i32
    %c0_i32_1 = arith.constant 0 : i32
    return %c0_i32, %c0_i32_0 : i32, i32
  }
  func.func @transform_9(%arg0: i32) -> (i32, i32) {
    %c0_i32 = arith.constant 0 : i32
    %c0_i32_0 = arith.constant 0 : i32
    %c0_i32_1 = arith.constant 0 : i32
    return %c0_i32, %c0_i32_0 : i32, i32
  }
  func.func @transform_10(%arg0: i32) -> (i32, i32) {
    %c0_i32 = arith.constant 0 : i32
    %c0_i32_0 = arith.constant 0 : i32
    %c0_i32_1 = arith.constant 0 : i32
    return %c0_i32, %c0_i32_0 : i32, i32
  }
  func.func @transform_11(%arg0: i32) -> (i32, i32) {
    %c0_i32 = arith.constant 0 : i32
    %c0_i32_0 = arith.constant 0 : i32
    %c0_i32_1 = arith.constant 0 : i32
    return %c0_i32, %c0_i32_0 : i32, i32
  }
  func.func @transform_12(%arg0: i32) -> (i32, i32) {
    %c0_i32 = arith.constant 0 : i32
    %c0_i32_0 = arith.constant 0 : i32
    %c0_i32_1 = arith.constant 0 : i32
    return %c0_i32, %c0_i32_0 : i32, i32
  }
  func.func @transform_13(%arg0: i32) -> (i32, i32) {
    %c0_i32 = arith.constant 0 : i32
    %c0_i32_0 = arith.constant 0 : i32
    %c0_i32_1 = arith.constant 0 : i32
    return %c0_i32, %c0_i32_0 : i32, i32
  }
  func.func @transform_14(%arg0: i32) -> (i32, i32) {
    %c0_i32 = arith.constant 0 : i32
    %c0_i32_0 = arith.constant 0 : i32
    %c0_i32_1 = arith.constant 0 : i32
    return %c0_i32, %c0_i32_0 : i32, i32
  }
  func.func @transform_15(%arg0: i32) -> (i32, i32) {
    %c0_i32 = arith.constant 0 : i32
    %c0_i32_0 = arith.constant 0 : i32
    return %arg0, %c0_i32 : i32, i32
  }
}

</mosaic_0001>

<bundles_post_ra>
// kernel: tpu_custom_call.1
= control target key start
LH: loop header
LB: loop body
LE: loop exit
PB: predicated region body
PF: predicated region fallthrough
CT: control target
= control target key end

     0   :  { %s1624_s0 = inlined_call_operand.hbm [shape: bf16[16,32], index: 0, kind: input, shape index: {}]   ;;  %s1625_s1 = inlined_call_operand.hbm [shape: bf16[32,64], index: 1, kind: input, shape index: {}]   ;;  %s1626_s2 = inlined_call_operand.hbm [shape: f32[1,64], index: 2, kind: input, shape index: {}]   ;;  %s1627_s3 = inlined_call_operand.hbm [shape: bf16[64,64], index: 3, kind: input, shape index: {}]   ;;  %s1628_s4 = inlined_call_operand.hbm [shape: f32[1,64], index: 4, kind: input, shape index: {}]   ;;  %s1629_s5 = inlined_call_operand.hbm [shape: bf16[64,128], index: 5, kind: input, shape index: {}]   ;;  %s1630_s6 = inlined_call_operand.vmem [shape: f32[1,128], index: 6, kind: input, shape index: {}]   ;;  %s1631_s7 = inlined_call_operand.hbm [shape: bf16[128,128], index: 7, kind: input, shape index: {}]   ;;  %s1632_s8 = inlined_call_operand.vmem [shape: f32[1,128], index: 8, kind: input, shape index: {}]   ;;  %s1633_s9 = inlined_call_operand.hbm [shape: bf16[128,256], index: 9, kind: input, shape index: {}]   ;;  %s1634_s10 = inlined_call_operand.vmem [shape: f32[1,256], index: 10, kind: input, shape index: {}]   ;;  %s1635_s11 = inlined_call_operand.hbm [shape: bf16[256,256], index: 11, kind: input, shape index: {}]   ;;  %s1636_s12 = inlined_call_operand.vmem [shape: f32[1,256], index: 12, kind: input, shape index: {}]   ;;  %s1637_s13 = inlined_call_operand.vmem [shape: f32[1,256], index: 13, kind: input, shape index: {}]   ;;  %s1638_s14 = inlined_call_operand.<no memory space> [shape: f32[1,1], index: 14, kind: input, shape index: {}]   ;;  %s1639_s15 = inlined_call_operand.vmem [shape: f32[16,1], index: 15, kind: output, shape index: {}]  }
   0x1   :  { %v20_v0 = vstv %s1638_s14 }
   0x2   :  { %21 = vst [vmem:[#allocation2] sm:$0x1] %v20_v0 }
   0x3   :  { %22 = vsyncpa [#allocation4], 0 }
   0x4   :  { %23 = vsyncpa [#allocation6], 0 }
   0x5   :  { %24 = vsyncpa [#allocation9], 0 }
   0x6   :  { %25 = vsyncpa [#allocation12], 0 }
   0x7   :  { %26 = vsyncpa [#allocation15], 0  ;;  %s44_s22 = sshll.u32 %s1625_s1, 4  ;;  %s1457_s23 = smov [#allocation5]   ;;  %s45_s22 = int_to_ptr.hbm [resolvable:$true] %s44_s22 }
   0x8   :  { %s46_s24 = sshll.u32 %s1457_s23, 4  ;;  %s68_s27 = sshll.u32 %s1627_s3, 4  ;;  %s47_s24 = int_to_ptr.vmem [resolvable:$true] %s46_s24  ;;  %s69_s27 = int_to_ptr.hbm [resolvable:$true] %s68_s27 }
   0x9   :  { %s1458_s28 = smov 64   ;;  %s1459_s14 = smov 4  }
   0xa   :  { %52 = dma.hbm_to_vmem [thread:$0]  %s45_s22, 256, %s47_s24, [#allocation6], %s1458_s28, %s1458_s28, %s1459_s14  }
   0xb   :  { %s1460_s29 = smov [#allocation8]   ;;  %s92_s1 = sshll.u32 %s1629_s5, 4  ;;  %s93_s1 = int_to_ptr.hbm [resolvable:$true] %s92_s1 }
   0xc   :  { %s70_s30 = sshll.u32 %s1460_s29, 4  ;;  %s122_s19 = sshll.u32 %s1633_s9, 4  ;;  %s71_s30 = int_to_ptr.vmem [resolvable:$true] %s70_s30  ;;  %s123_s19 = int_to_ptr.hbm [resolvable:$true] %s122_s19 }
   0xd   :  { %76 = dma.hbm_to_vmem [thread:$0]  %s69_s27, 512, %s71_s30, [#allocation9], %s1458_s28, %s1458_s28, %s1459_s14  }
   0xe   :  { %s1461_s20 = smov [#allocation11]   ;;  %s1462_s22 = smov [#allocation14]  }
   0xf   :  { %s94_s21 = sshll.u32 %s1461_s20, 4  ;;  %s124_s5 = sshll.u32 %s1462_s22, 4  ;;  %s95_s21 = int_to_ptr.vmem [resolvable:$true] %s94_s21  ;;  %s125_s5 = int_to_ptr.vmem [resolvable:$true] %s124_s5 }
  0x10   :  { %100 = dma.hbm_to_vmem [thread:$0]  %s93_s1, 512, %s95_s21, [#allocation12], %s1458_s28, %s1458_s28, %s1459_s14  }
  0x11   :  { %s1463_s23 = smov 128   ;;  %s1464_s24 = smov 8  }
  0x12   :  { %130 = dma.hbm_to_vmem [thread:$0]  %s123_s19, 2048, %s125_s5, [#allocation15], %s1463_s23, %s1463_s23, %s1464_s24  }
  0x13   :  { %s31_s9 = sshll.u32 %s1624_s0, 4  ;;  %s1465_s27 = smov [#allocation3]   ;;  %s32_s9 = int_to_ptr.hbm [resolvable:$true] %s31_s9 }
  0x14   :  { %s33_s29 = sshll.u32 %s1465_s27, 4  ;;  %s58_s17 = sshll.u32 %s1626_s2, 4  ;;  %s34_s29 = int_to_ptr.vmem [resolvable:$true] %s33_s29  ;;  %s59_s17 = int_to_ptr.hbm [resolvable:$true] %s58_s17 }
  0x15   :  { %39 = dma.hbm_to_vmem [thread:$0]  %s32_s9, 128, %s34_s29, [#allocation4], %s1458_s28, %s1458_s28, %s1459_s14  }
  0x16   :  { %s1466_s1 = smov [#allocation7]   ;;  %s82_s20 = sshll.u32 %s1628_s4, 4  ;;  %s83_s20 = int_to_ptr.hbm [resolvable:$true] %s82_s20 }
  0x17   :  { %s60_s3 = sshll.u32 %s1466_s1, 4  ;;  %s107_s22 = sshll.u32 %s1631_s7, 4  ;;  %s61_s3 = int_to_ptr.vmem [resolvable:$true] %s60_s3  ;;  %s108_s22 = int_to_ptr.hbm [resolvable:$true] %s107_s22 }
  0x18   :  { %63 = dma.hbm_to_vmem [thread:$0]  %s59_s17, 16, %s61_s3, [#allocation6]  }
  0x19   :  { %s1467_s5 = smov [#allocation10]   ;;  %s1468_s25 = smov [#allocation13]  }
  0x1a   :  { %s84_s2 = sshll.u32 %s1467_s5, 4  ;;  %s109_s26 = sshll.u32 %s1468_s25, 4  ;;  %s85_s2 = int_to_ptr.vmem [resolvable:$true] %s84_s2  ;;  %s110_s26 = int_to_ptr.vmem [resolvable:$true] %s109_s26 }
  0x1b   :  { %87 = dma.hbm_to_vmem [thread:$0]  %s83_s20, 16, %s85_s2, [#allocation9]  }
  0x1c   :  { %s137_s29 = sshll.u32 %s1635_s11, 4  ;;  %s1469_s4 = smov [#allocation16]   ;;  %s138_s29 = int_to_ptr.hbm [resolvable:$true] %s137_s29 }
  0x1d   :  { %115 = dma.hbm_to_vmem [thread:$0]  %s108_s22, 1024, %s110_s26, [#allocation12], %s1458_s28, %s1458_s28, %s1459_s14  }
  0x1e   :  { %s139_s30 = sshll.u32 %s1469_s4, 4  ;;  %s140_s30 = int_to_ptr.vmem [resolvable:$true] %s139_s30 }
  0x1f   :  { %145 = dma.hbm_to_vmem [thread:$0]  %s138_s29, 4096, %s140_s30, [#allocation15], %s1463_s23, %s1463_s23, %s1464_s24  }
  0x20   :  { %1447 = dma.done.wait [#allocation4], 128  }
  0x21   :  { %1448 = vsyncadd [#allocation4], 4294967168 }
  0x22   :  { %1449 = dma.done.wait [#allocation6], 272  }
  0x23   :  { %1450 = vsyncadd [#allocation6], 4294967024 }
  0x24   :  { %1451 = dma.done.wait [#allocation9], 528  }
  0x25   :  { %1452 = vsyncadd [#allocation9], 4294966768 }
  0x26   :  { %1453 = dma.done.wait [#allocation12], 1536  }
  0x27   :  { %1454 = vsyncadd [#allocation12], 4294965760 }
  0x28   :  { %1455 = dma.done.wait [#allocation15], 6144  }
  0x29   :  { %1456 = vsyncadd [#allocation15], 4294961152  ;;  %v1144_v1 = vld [vmem:[#allocation5 + $0x8] sm:$0xff]  ;;  %v1143_v2 = vld [vmem:[#allocation5] sm:$0xff]  ;;  %vm216_vm0 = vcmask 261120   ;;  %vm273_vm1 = vcmask 523264  }
  0x2a   :  { %226 = vmatpush.bf16.msra.mxu0 %v1144_v1  ;;  %v1142_v3 = vld [vmem:[#allocation3] sm:$0xff]  ;;  %v1148_v4 = vld [vmem:[#allocation8 + $0x18] sm:$0xff]  ;;  %v1147_v5 = vld [vmem:[#allocation8 + $0x10] sm:$0xff]  ;;  %vm859_vm2 = vcmask 7168  }
  0x2b   :  { %281 = vmatpush.bf16.msra.mxu2 %v1148_v4  ;;  %v1146_v6 = vld [vmem:[#allocation8 + $0x8] sm:$0xff]  ;;  %v1145_v7 = vld [vmem:[#allocation8] sm:$0xff]  ;;  %v1222_v10 = vld [vmem:[#allocation7] ss:$0 sm:$0xff] }
  0x2c   :  { %v1152_v8 = vld [vmem:[#allocation11 + $0x18] sm:$0xff]  ;;  %v1151_v17 = vld [vmem:[#allocation11 + $0x10] sm:$0xff]  ;;  %v1150_v18 = vld [vmem:[#allocation11 + $0x8] sm:$0xff] }
  0x2d   :  { %v1149_v19 = vld [vmem:[#allocation11] sm:$0xff]  ;;  %v1160_v20 = vld [vmem:[#allocation13 + $0x38] sm:$0xff]  ;;  %v1159_v21 = vld [vmem:[#allocation13 + $0x30] sm:$0xff] }
  0x2e   :  { %227 = vmatpush.bf16.msra.mxu0 %v1143_v2  ;;  %418 = vmatpush.bf16.msra.mxu3 %v1160_v20  ;;  %v1158_v22 = vld [vmem:[#allocation13 + $0x28] sm:$0xff]  ;;  %v1157_v23 = vld [vmem:[#allocation13 + $0x20] sm:$0xff]  ;;  %v1223_v25 = vld [vmem:[#allocation10] ss:$0 sm:$0xff] }
  0x2f   :  { %282 = vmatpush.bf16.msra.mxu2 %v1147_v5  ;;  %v1156_v32 = vld [vmem:[#allocation13 + $0x18] sm:$0xff]  ;;  %v1155_v33 = vld [vmem:[#allocation13 + $0x10] sm:$0xff]  ;;  %v1154_v34 = vld [vmem:[#allocation13 + $0x8] sm:$0xff] }
  0x30   :  { %v1153_v35 = vld [vmem:[#allocation13] sm:$0xff]  ;;  %v1008_v36 = vld [vmem:[#allocation14 + $0x70] sm:$0xf]  ;;  %v1176_v37 = vld [vmem:[#allocation14 + $0x74] sm:$0xf0] }
  0x31   :  { %883 = vmatmul.msk.bf16.vlgmr.msra.gmra.mxu0 %vm216_vm0, %v1142_v3  ;;  %v1175_v38 = vld [vmem:[#allocation14 + $0x74] sm:$0xf]  ;;  %v1009_v39 = vor.u32 %v1176_v37, %v1008_v36  ;;  %v1010_v40 = vld [vmem:[#allocation14 + $0x78] sm:$0xf0]  ;;  %v1000_v41 = vld [vmem:[#allocation14 + $0x60] sm:$0xf] }
  0x32   :  { %419 = vmatpush.bf16.msra.mxu3 %v1159_v21  ;;  %v1174_v42 = vld [vmem:[#allocation14 + $0x64] sm:$0xf0]  ;;  %v1013_v43 = vor.u32 %v1175_v38, %v1010_v40  ;;  %v1173_v44 = vld [vmem:[#allocation14 + $0x64] sm:$0xf]  ;;  %v1002_v45 = vld [vmem:[#allocation14 + $0x68] sm:$0xf0] }
  0x33   :  { %283 = vmatpush.bf16.msra.mxu2 %v1146_v6  ;;  %537 = vmatpush.bf16.msrb.mxu0 %v1009_v39  ;;  %v1001_v46 = vor.u32 %v1174_v42, %v1000_v41  ;;  %v1005_v47 = vor.u32 %v1173_v44, %v1002_v45  ;;  %v992_v48 = vld [vmem:[#allocation14 + $0x50] sm:$0xf]  ;;  %v1172_v49 = vld [vmem:[#allocation14 + $0x54] sm:$0xf0]  ;;  %v1171_v50 = vld [vmem:[#allocation14 + $0x54] sm:$0xf] }
  0x34   :  { %551 = vmatpush.bf16.msra.mxu1 %v1013_v43  ;;  %v994_v51 = vld [vmem:[#allocation14 + $0x58] sm:$0xf0]  ;;  %v993_v52 = vor.u32 %v1172_v49, %v992_v48  ;;  %v984_v54 = vld [vmem:[#allocation14 + $0x40] sm:$0xf]  ;;  %v1170_v55 = vld [vmem:[#allocation14 + $0x44] sm:$0xf0] }
  0x35   :  { %v997_v53 = vor.u32 %v1171_v50, %v994_v51  ;;  %v1169_v56 = vld [vmem:[#allocation14 + $0x44] sm:$0xf]  ;;  %v986_v57 = vld [vmem:[#allocation14 + $0x48] sm:$0xf0]  ;;  %v985_v58 = vor.u32 %v1170_v55, %v984_v54  ;;  %v1224_v61 = vld [vmem:[%s1630_s6] ss:$0 sm:$0xff] }
  0x36   :  { %420 = vmatpush.bf16.msra.mxu3 %v1158_v22  ;;  %v989_v59 = vor.u32 %v1169_v56, %v986_v57  ;;  %v976_v4 = vld [vmem:[#allocation14 + $0x30] sm:$0xf]  ;;  %v1168_v5 = vld [vmem:[#allocation14 + $0x34] sm:$0xf0]  ;;  %v1167_v6 = vld [vmem:[#allocation14 + $0x34] sm:$0xf] }
  0x37   :  { %284 = vmatpush.bf16.msra.mxu2 %v1145_v7  ;;  %538 = vmatpush.bf16.msrb.mxu0 %v1001_v46  ;;  %v977_v7 = vor.u32 %v1168_v5, %v976_v4  ;;  %v962_v20 = vld [vmem:[#allocation14 + $0x18] sm:$0xf0]  ;;  %v952_v22 = vld [vmem:[#allocation14] sm:$0xf]  ;;  %v1207_v37 = vld [vmem:[#allocation16 + $0xf4] sm:$0xf] }
  0x38   :  { %552 = vmatpush.bf16.msra.mxu1 %v1005_v47  ;;  %v1138_v38 = vld [vmem:[#allocation16 + $0xf8] sm:$0xf0]  ;;  %v1064_v39 = vld [vmem:[#allocation16 + $0x60] sm:$0xf]  ;;  %v1190_v41 = vld [vmem:[#allocation16 + $0x64] sm:$0xf0] }
  0x39   :  { %v1141_v40 = vor.u32 %v1207_v37, %v1138_v38  ;;  %v1128_v42 = vld [vmem:[#allocation16 + $0xe0] sm:$0xf]  ;;  %v1206_v43 = vld [vmem:[#allocation16 + $0xe4] sm:$0xf0]  ;;  %v1065_v44 = vor.u32 %v1190_v41, %v1064_v39  ;;  %v1189_v46 = vld [vmem:[#allocation16 + $0x64] sm:$0xf] }
  0x3a   :  { %421 = vmatpush.bf16.msra.mxu3 %v1157_v23  ;;  %v1162_v23 = vld [vmem:[#allocation14 + $0x4] sm:$0xf0]  ;;  %v1129_v45 = vor.u32 %v1206_v43, %v1128_v42  ;;  %v1066_v47 = vld [vmem:[#allocation16 + $0x68] sm:$0xf0]  ;;  %v1205_v48 = vld [vmem:[#allocation16 + $0xe4] sm:$0xf] }
  0x3b   :  { %337 = vmatpush.bf16.msrb.mxu2 %v1152_v8  ;;  %539 = vmatpush.bf16.msrb.mxu0 %v993_v52  ;;  %v978_v8 = vld [vmem:[#allocation14 + $0x38] sm:$0xf0]  ;;  %v1069_v49 = vor.u32 %v1189_v46, %v1066_v47  ;;  %v1130_v50 = vld [vmem:[#allocation16 + $0xe8] sm:$0xf0]  ;;  %v1056_v51 = vld [vmem:[#allocation16 + $0x50] sm:$0xf] }
  0x3c   :  { %553 = vmatpush.bf16.msra.mxu1 %v997_v53  ;;  %v1188_v52 = vld [vmem:[#allocation16 + $0x54] sm:$0xf0]  ;;  %v1133_v53 = vor.u32 %v1205_v48, %v1130_v50  ;;  %v1120_v54 = vld [vmem:[#allocation16 + $0xd0] sm:$0xf]  ;;  %v1187_v56 = vld [vmem:[#allocation16 + $0x54] sm:$0xf] }
  0x3d   :  { %v1204_v55 = vld [vmem:[#allocation16 + $0xd4] sm:$0xf0]  ;;  %v1057_v57 = vor.u32 %v1188_v52, %v1056_v51  ;;  %v1185_v4 = vld [vmem:[#allocation16 + $0x44] sm:$0xf]  ;;  %v1050_v5 = vld [vmem:[#allocation16 + $0x48] sm:$0xf0] }
  0x3e   :  { %422 = vmatpush.bf16.msra.mxu3 %v1156_v32  ;;  %v1208_v32 = vld [vmem:[#allocation16 + $0xf4] sm:$0xf0]  ;;  %v1181_v37 = vld [vmem:[#allocation16 + $0x24] sm:$0xf]  ;;  %v1034_v38 = vld [vmem:[#allocation16 + $0x28] sm:$0xf0] }
  0x3f   :  { %338 = vmatpush.bf16.msrb.mxu2 %v1151_v17  ;;  %540 = vmatpush.bf16.msrb.mxu0 %v985_v58  ;;  %v1164_v17 = vld [vmem:[#allocation14 + $0x14] sm:$0xf0]  ;;  %v1058_v58 = vld [vmem:[#allocation16 + $0x58] sm:$0xf0]  ;;  %v1197_v41 = vld [vmem:[#allocation16 + $0xa4] sm:$0xf] }
  0x40   :  { %554 = vmatpush.bf16.msra.mxu1 %v989_v59  ;;  %v1203_v59 = vld [vmem:[#allocation16 + $0xd4] sm:$0xf]  ;;  %v1098_v42 = vld [vmem:[#allocation16 + $0xa8] sm:$0xf0]  ;;  %v1088_v46 = vld [vmem:[#allocation16 + $0x90] sm:$0xf] }
  0x41   :  { %v1101_v43 = vor.u32 %v1197_v41, %v1098_v42  ;;  %v1196_v48 = vld [vmem:[#allocation16 + $0x94] sm:$0xf0]  ;;  %v1026_v50 = vld [vmem:[#allocation16 + $0x18] sm:$0xf0] }
  0x42   :  { %423 = vmatpush.bf16.msra.mxu3 %v1155_v33  ;;  %v1191_v33 = vld [vmem:[#allocation16 + $0x74] sm:$0xf]  ;;  %v1089_v51 = vor.u32 %v1196_v48, %v1088_v46 }
  0x43   :  { %339 = vmatpush.bf16.msrb.mxu2 %v1150_v18  ;;  %541 = vmatpush.bf16.msrb.mxu0 %v977_v7  ;;  %v1163_v18 = vld [vmem:[#allocation14 + $0x14] sm:$0xf]  ;;  %v1114_v7 = vld [vmem:[#allocation16 + $0xc8] sm:$0xf0] }
  0x44   :  { %v965_v21 = vor.u32 %v1163_v18, %v962_v20  ;;  %v1040_v20 = vld [vmem:[#allocation16 + $0x30] sm:$0xf] }
  0x46   :  { %424 = vmatpush.bf16.msra.mxu3 %v1154_v34  ;;  %v1074_v34 = vld [vmem:[#allocation16 + $0x78] sm:$0xf0] }
  0x47   :  { %340 = vmatpush.bf16.msrb.mxu2 %v1149_v19  ;;  %v1077_v36 = vor.u32 %v1191_v33, %v1074_v34  ;;  %v1182_v33 = vld [vmem:[#allocation16 + $0x24] sm:$0xf0]  ;;  %v1096_v34 = vld [vmem:[#allocation16 + $0xa0] sm:$0xf] }
  0x4a   :  { %425 = vmatpush.bf16.msra.mxu3 %v1153_v35 }
  0xae   :  { %v229_v9 = vpop.f32.mrf.mxu0 }
  0xaf   :  { %v230_v11 = vadd.f32 %v1222_v10, %v229_v9  ;;  %v981_v9 = vor.u32 %v1167_v6, %v978_v8  ;;  %v1201_v6 = vld [vmem:[#allocation16 + $0xc4] sm:$0xf] }
  0xb1   :  { %v234_v14 = vmax.f32 %v230_v11, 0.0  ;;  %555 = vmatpush.bf16.msra.mxu1 %v981_v9  ;;  %v1166_v11 = vld [vmem:[#allocation14 + $0x24] sm:$0xf0] }
  0xb6   :  { %v231_v12 = vpop.f32.mrf.mxu0 }
  0xb7   :  { %v232_v13 = vadd.f32 %v1222_v10, %v231_v12  ;;  %v968_v10 = vld [vmem:[#allocation14 + $0x20] sm:$0xf]  ;;  %v1165_v12 = vld [vmem:[#allocation14 + $0x24] sm:$0xf] }
  0xb9   :  { %v235_v15 = vmax.f32 %v232_v13, 0.0  ;;  %v969_v13 = vor.u32 %v1166_v11, %v968_v10  ;;  %v1053_v10 = vor.u32 %v1185_v4, %v1050_v5  ;;  %v1117_v11 = vor.u32 %v1201_v6, %v1114_v7  ;;  %v451_v4 = vld [vmem:[%s1634_s10] sm:$0x3] }
  0xba   :  { %v453_v7 = vperm.slane %v451_v4, 0 }
  0xbb   :  { %v236_v16 = vpack.c.bf16 %v235_v15, %v234_v14  ;;  %v970_v14 = vld [vmem:[#allocation14 + $0x28] sm:$0xf0]  ;;  %542 = vmatpush.bf16.msrb.mxu0 %v969_v13  ;;  %v1225_v13 = vld [vmem:[%s1632_s8] ss:$0 sm:$0xff] }
  0xbc   :  { %v973_v15 = vor.u32 %v1165_v12, %v970_v14 }
  0xbd   :  { %900 = vmatmul.msk.bf16.vlgmr.msra.gmra.mxu2 %vm273_vm1, %v236_v16  ;;  %v960_v16 = vld [vmem:[#allocation14 + $0x10] sm:$0xf] }
  0xbe   :  { %556 = vmatpush.bf16.msra.mxu1 %v973_v15  ;;  %v961_v19 = vor.u32 %v1164_v17, %v960_v16 }
  0xc0   :  { %543 = vmatpush.bf16.msrb.mxu0 %v961_v19 }
  0xc2   :  { %557 = vmatpush.bf16.msra.mxu1 %v965_v21  ;;  %v1184_v21 = vld [vmem:[#allocation16 + $0x34] sm:$0xf0] }
 0x140   :  { %v286_v24 = vpop.f32.mrf.mxu2 }
 0x141   :  { %v287_v26 = vadd.f32 %v1223_v25, %v286_v24  ;;  %v1161_v24 = vld [vmem:[#allocation14 + $0x4] sm:$0xf] }
 0x143   :  { %v291_v29 = vmax.f32 %v287_v26, 0.0  ;;  %v954_v26 = vld [vmem:[#allocation14 + $0x8] sm:$0xf0] }
 0x148   :  { %v288_v27 = vpop.f32.mrf.mxu2 }
 0x149   :  { %v289_v28 = vadd.f32 %v1223_v25, %v288_v27  ;;  %v953_v25 = vor.u32 %v1162_v23, %v952_v22  ;;  %v957_v27 = vor.u32 %v1161_v24, %v954_v26  ;;  %v1104_v22 = vld [vmem:[#allocation16 + $0xb0] sm:$0xf]  ;;  %v1041_v23 = vor.u32 %v1184_v21, %v1040_v20  ;;  %v1200_v24 = vld [vmem:[#allocation16 + $0xb4] sm:$0xf0]  ;;  %v1042_v26 = vld [vmem:[#allocation16 + $0x38] sm:$0xf0] }
 0x14a   :  { %v603_v21 = vld [vmem:[%s1636_s12] sm:$0x3] }
 0x14b   :  { %v292_v30 = vmax.f32 %v289_v28, 0.0  ;;  %544 = vmatpush.bf16.msrb.mxu0 %v953_v25  ;;  %558 = vmatpush.bf16.msra.mxu1 %v957_v27  ;;  %v1072_v28 = vld [vmem:[#allocation16 + $0x70] sm:$0xf]  ;;  %v1183_v25 = vld [vmem:[#allocation16 + $0x34] sm:$0xf]  ;;  %v1105_v27 = vor.u32 %v1200_v24, %v1104_v22  ;;  %v606_v22 = vperm.slane %v603_v21, 1 }
 0x14d   :  { %v293_v31 = vpack.c.bf16 %v292_v30, %v291_v29  ;;  %v1192_v29 = vld [vmem:[#allocation16 + $0x74] sm:$0xf0]  ;;  %v1136_v30 = vld [vmem:[#allocation16 + $0xf0] sm:$0xf] }
 0x14e   :  { %v1137_v35 = vor.u32 %v1208_v32, %v1136_v30  ;;  %v1106_v30 = vld [vmem:[#allocation16 + $0xb8] sm:$0xf0]  ;;  %v1032_v32 = vld [vmem:[#allocation16 + $0x20] sm:$0xf] }
 0x14f   :  { %917 = vmatmul.msk.bf16.vlgmr.msrb.gmra.mxu2 %vm273_vm1, %v293_v31  ;;  %v1073_v31 = vor.u32 %v1192_v29, %v1072_v28  ;;  %797 = vmatpush.bf16.msra.mxu0 %v1077_v36  ;;  %v1045_v28 = vor.u32 %v1183_v25, %v1042_v26  ;;  %v1199_v29 = vld [vmem:[#allocation16 + $0xb4] sm:$0xf]  ;;  %v1198_v36 = vld [vmem:[#allocation16 + $0xa4] sm:$0xf0]  ;;  %v605_v25 = vperm.slane %v603_v21, 0 }
 0x150   :  { %783 = vmatpush.bf16.msrb.mxu3 %v1137_v35  ;;  %811 = vmatpush.bf16.msrb.mxu1 %v1141_v40  ;;  %v1033_v35 = vor.u32 %v1182_v33, %v1032_v32  ;;  %v1097_v39 = vor.u32 %v1198_v36, %v1096_v34  ;;  %v1037_v40 = vor.u32 %v1181_v37, %v1034_v38  ;;  %v835_v33 = vld [vmem:[%s1637_s13] sm:$0x3] }
 0x151   :  { %769 = vmatpush.bf16.msra.mxu2 %v1073_v31  ;;  %v1109_v31 = vor.u32 %v1199_v29, %v1106_v30  ;;  %v837_v38 = vperm.slane %v835_v33, 0 }
 0x153   :  { %798 = vmatpush.bf16.msra.mxu0 %v1069_v49  ;;  %v1179_v49 = vld [vmem:[#allocation16 + $0x14] sm:$0xf] }
 0x154   :  { %784 = vmatpush.bf16.msrb.mxu3 %v1129_v45  ;;  %812 = vmatpush.bf16.msrb.mxu1 %v1133_v53  ;;  %v1180_v45 = vld [vmem:[#allocation16 + $0x14] sm:$0xf0]  ;;  %v1029_v52 = vor.u32 %v1179_v49, %v1026_v50  ;;  %v1195_v53 = vld [vmem:[#allocation16 + $0x94] sm:$0xf] }
 0x155   :  { %770 = vmatpush.bf16.msra.mxu2 %v1065_v44  ;;  %v1024_v44 = vld [vmem:[#allocation16 + $0x10] sm:$0xf] }
 0x156   :  { %v1025_v47 = vor.u32 %v1180_v45, %v1024_v44 }
 0x159   :  { %771 = vmatpush.bf16.msra.mxu2 %v1057_v57  ;;  %v1178_v57 = vld [vmem:[#allocation16 + $0x4] sm:$0xf0] }
 0x1d2   :  { %v342_v60 = vpop.f32.mrf.mxu2 }
 0x1d3   :  { %v343_v62 = vadd.f32 %v1224_v61, %v342_v60  ;;  %v1122_v60 = vld [vmem:[#allocation16 + $0xd8] sm:$0xf0] }
 0x1d5   :  { %v347_v1 = vmax.f32 %v343_v62, 0.0  ;;  %v1061_v62 = vor.u32 %v1187_v56, %v1058_v58  ;;  %v1016_v56 = vld [vmem:[#allocation16] sm:$0xf] }
 0x1d6   :  { %v1080_v58 = vld [vmem:[#allocation16 + $0x80] sm:$0xf] }
 0x1d7   :  { %799 = vmatpush.bf16.msra.mxu0 %v1061_v62  ;;  %v1018_v62 = vld [vmem:[#allocation16 + $0x8] sm:$0xf0] }
 0x1da   :  { %v344_v63 = vpop.f32.mrf.mxu2 }
 0x1db   :  { %v345_v0 = vadd.f32 %v1224_v61, %v344_v63  ;;  %v1121_v61 = vor.u32 %v1204_v55, %v1120_v54  ;;  %v1048_v63 = vld [vmem:[#allocation16 + $0x40] sm:$0xf]  ;;  %800 = vmatpush.bf16.msra.mxu0 %v1053_v10  ;;  %v1090_v54 = vld [vmem:[#allocation16 + $0x98] sm:$0xf0] }
 0x1dc   :  { %v1093_v55 = vor.u32 %v1195_v53, %v1090_v54 }
 0x1dd   :  { %v348_v2 = vmax.f32 %v345_v0, 0.0  ;;  %v1186_v0 = vld [vmem:[#allocation16 + $0x44] sm:$0xf0]  ;;  %785 = vmatpush.bf16.msrb.mxu3 %v1121_v61  ;;  %v1177_v61 = vld [vmem:[#allocation16 + $0x4] sm:$0xf] }
 0x1de   :  { %v1049_v8 = vor.u32 %v1186_v0, %v1048_v63  ;;  %v1021_v0 = vor.u32 %v1177_v61, %v1018_v62 }
 0x1df   :  { %v349_v3 = vpack.c.bf16 %v348_v2, %v347_v1  ;;  %v1112_v1 = vld [vmem:[#allocation16 + $0xc0] sm:$0xf]  ;;  %v1125_v2 = vor.u32 %v1203_v59, %v1122_v60  ;;  %801 = vmatpush.bf16.msra.mxu0 %v1045_v28  ;;  %v1017_v59 = vor.u32 %v1178_v57, %v1016_v56  ;;  %v1194_v60 = vld [vmem:[#allocation16 + $0x84] sm:$0xf0] }
 0x1e0   :  { %772 = vmatpush.bf16.msra.mxu2 %v1049_v8  ;;  %v1081_v63 = vor.u32 %v1194_v60, %v1080_v58  ;;  %v454_v8 = vperm.slane %v451_v4, 1 }
 0x1e1   :  { %426 = vmatmul.bf16.vlgmr.msra.gmra.mxu3 %v349_v3  ;;  %v1202_v3 = vld [vmem:[#allocation16 + $0xc4] sm:$0xf0]  ;;  %813 = vmatpush.bf16.msrb.mxu1 %v1125_v2  ;;  %v1082_v2 = vld [vmem:[#allocation16 + $0x88] sm:$0xf0] }
 0x1e2   :  { %v1113_v9 = vor.u32 %v1202_v3, %v1112_v1  ;;  %v1193_v1 = vld [vmem:[#allocation16 + $0x84] sm:$0xf] }
 0x1e3   :  { %802 = vmatpush.bf16.msra.mxu0 %v1037_v40  ;;  %v1085_v3 = vor.u32 %v1193_v1, %v1082_v2 }
 0x1e4   :  { %786 = vmatpush.bf16.msrb.mxu3 %v1113_v9  ;;  %773 = vmatpush.bf16.msra.mxu2 %v1041_v23 }
 0x1e5   :  { %814 = vmatpush.bf16.msrb.mxu1 %v1117_v11 }
 0x1e7   :  { %803 = vmatpush.bf16.msra.mxu0 %v1029_v52 }
 0x1e8   :  { %787 = vmatpush.bf16.msrb.mxu3 %v1105_v27  ;;  %774 = vmatpush.bf16.msra.mxu2 %v1033_v35 }
 0x1e9   :  { %815 = vmatpush.bf16.msrb.mxu1 %v1109_v31 }
 0x1eb   :  { %804 = vmatpush.bf16.msra.mxu0 %v1021_v0 }
 0x1ec   :  { %788 = vmatpush.bf16.msrb.mxu3 %v1097_v39  ;;  %775 = vmatpush.bf16.msra.mxu2 %v1025_v47  ;;  %v838_v39 = vperm.slane %v835_v33, 1 }
 0x1ed   :  { %816 = vmatpush.bf16.msrb.mxu1 %v1101_v43 }
 0x1f0   :  { %789 = vmatpush.bf16.msrb.mxu3 %v1089_v51  ;;  %776 = vmatpush.bf16.msra.mxu2 %v1017_v59  ;;  %v1226_v59 = vld [vmem:[#allocation2] ss:$0 sm:$0xff] }
 0x1f1   :  { %817 = vmatpush.bf16.msrb.mxu1 %v1093_v55 }
 0x1f4   :  { %790 = vmatpush.bf16.msrb.mxu3 %v1081_v63 }
 0x1f5   :  { %818 = vmatpush.bf16.msrb.mxu1 %v1085_v3 }
 0x264   :  { %v427_v12 = vpop.f32.mrf.mxu3 }
 0x265   :  { %v428_v14 = vadd.f32 %v1225_v13, %v427_v12 }
 0x267   :  { %v432_v17 = vmax.f32 %v428_v14, 0.0 }
 0x26c   :  { %v429_v15 = vpop.f32.mrf.mxu3 }
 0x26d   :  { %v430_v16 = vadd.f32 %v1225_v13, %v429_v15 }
 0x26f   :  { %v433_v18 = vmax.f32 %v430_v16, 0.0 }
 0x271   :  { %v434_v19 = vpack.c.bf16 %v433_v18, %v432_v17 }
 0x273   :  { %545 = vmatmul.bf16.vlgmr.msrb.gmra.mxu0 %v434_v19  ;;  %559 = vmatmul.bf16.vlgmr.msra.gmra.mxu1 %v434_v19 }
 0x2f0   :  { %v546_v5 = vpop.f32.mrf.mxu0  ;;  %v560_v6 = vpop.f32.mrf.mxu1 }
 0x2f1   :  { %v547_v9 = vadd.f32 %v546_v5, %v453_v7  ;;  %v561_v10 = vadd.f32 %v560_v6, %v454_v8 }
 0x2f3   :  { %v565_v15 = vmax.f32 %v547_v9, 0.0  ;;  %v566_v16 = vmax.f32 %v561_v10, 0.0 }
 0x2f8   :  { %v548_v11 = vpop.f32.mrf.mxu0  ;;  %v562_v12 = vpop.f32.mrf.mxu1 }
 0x2f9   :  { %v549_v13 = vadd.f32 %v548_v11, %v453_v7  ;;  %v563_v14 = vadd.f32 %v562_v12, %v454_v8 }
 0x2fb   :  { %v567_v17 = vmax.f32 %v549_v13, 0.0  ;;  %v568_v18 = vmax.f32 %v563_v14, 0.0 }
 0x2fd   :  { %v569_v19 = vpack.c.bf16 %v567_v17, %v565_v15  ;;  %v570_v20 = vpack.c.bf16 %v568_v18, %v566_v16 }
 0x2ff   :  { %777 = vmatmul.bf16.vlgmr.msra.gmra.mxu2 %v569_v19  ;;  %791 = vmatmul.bf16.vlgmr.msrb.gmra.mxu3 %v570_v20 }
 0x300   :  { %805 = vmatmul.bf16.vlgmr.msra.gmra.mxu0 %v569_v19  ;;  %819 = vmatmul.bf16.vlgmr.msrb.gmra.mxu1 %v570_v20 }
 0x37d   :  { %v806_v23 = vpop.f32.mrf.mxu0  ;;  %v820_v26 = vpop.f32.mrf.mxu1 }
 0x37e   :  { %v807_v24 = vadd.f32 %v806_v23, %v606_v22 }
 0x380   :  { %v821_v29 = vadd.f32 %v820_v26, %v807_v24 }
 0x382   :  { %v778_v27 = vpop.f32.mrf.mxu2  ;;  %v792_v28 = vpop.f32.mrf.mxu3  ;;  %v826_v34 = vmax.f32 %v821_v29, 0.0 }
 0x383   :  { %v779_v30 = vadd.f32 %v778_v27, %v605_v25 }
 0x385   :  { %v793_v31 = vadd.f32 %v792_v28, %v779_v30  ;;  %v808_v32 = vpop.f32.mrf.mxu0  ;;  %v822_v40 = vpop.f32.mrf.mxu1 }
 0x386   :  { %v809_v36 = vadd.f32 %v808_v32, %v606_v22 }
 0x387   :  { %v825_v35 = vmax.f32 %v793_v31, 0.0 }
 0x388   :  { %v823_v42 = vadd.f32 %v822_v40, %v809_v36 }
 0x389   :  { %v829_v37 = vpack.c.bf16 %v826_v34, %v825_v35 }
 0x38a   :  { %v780_v41 = vpop.f32.mrf.mxu2  ;;  %v794_v46 = vpop.f32.mrf.mxu3  ;;  %v828_v50 = vmax.f32 %v823_v42, 0.0 }
 0x38b   :  { %v781_v43 = vadd.f32 %v780_v41, %v605_v25  ;;  %v831_v44 = vunpack.c.l.bf16 %v829_v37  ;;  %v832_v45 = vunpack.c.h.bf16 %v829_v37 }
 0x38d   :  { %v795_v47 = vadd.f32 %v794_v46, %v781_v43  ;;  %v841_v48 = vmul.f32 %v837_v38, %v831_v44  ;;  %v842_v49 = vmul.f32 %v838_v39, %v832_v45 }
 0x38f   :  { %v827_v51 = vmax.f32 %v795_v47, 0.0  ;;  %v845_v52 = vadd.f32 %v842_v49, %v841_v48 }
 0x391   :  { %v830_v53 = vpack.c.bf16 %v828_v50, %v827_v51  ;;  %846 = vadd.xlane.f32.xlu0 %v845_v52 }
 0x393   :  { %v833_v54 = vunpack.c.l.bf16 %v830_v53  ;;  %v834_v55 = vunpack.c.h.bf16 %v830_v53 }
 0x395   :  { %v843_v56 = vmul.f32 %v837_v38, %v833_v54  ;;  %v844_v57 = vmul.f32 %v838_v39, %v834_v55 }
 0x397   :  { %v848_v58 = vadd.f32 %v844_v57, %v843_v56 }
 0x399   :  { %849 = vadd.xlane.f32.xlu0 %v848_v58 }
 0x404   :  { %v847_v60 = vpop.xlane.xlu0 %846 }
 0x405   :  { %v855_v61 = vadd.f32 %v1226_v59, %v847_v60 }
 0x407   :  { %1227 = vtanh.f32 %v855_v61 }
 0x40c   :  { %v850_v62 = vpop.xlane.xlu0 %849 }
 0x40d   :  { %v1228_v63 = vpop.eup %1227  ;;  %v856_v0 = vadd.f32 %v1226_v59, %v850_v62 }
 0x40e   :  { %860 = vst.msk [vmem:[%s1639_s15] sm:$0xff] %vm859_vm2, %v1228_v63 }
 0x40f   :  { %1229 = vtanh.f32 %v856_v0 }
 0x415   :  { %v1230_v1 = vpop.eup %1229 }
 0x416   :  { %861 = vst.msk [vmem:[%s1639_s15 + $0x8] sm:$0xff] %vm859_vm2, %v1230_v1 }
 0x417   :  { %866 = vsyncpa [#allocation4], 1 }
 0x418   :  { %867 = vsyncpa [#allocation6], 1 }
 0x419   :  { %868 = vsyncpa [#allocation9], 1 }
 0x41a   :  { %869 = vsyncpa [#allocation12], 1 }
 0x41b   :  { %870 = vsyncpa [#allocation15], 1 }

</bundles_post_ra>
